<compile_context>
chip_gen: v5e
topology: v5e:2x2
jax: 0.10.0
libtpu: 0.0.40
codegen_flags: <defaults>
</compile_context>

<pallas_src>
import jax
import jax.numpy as jnp
from jax.experimental import pallas as pl
from jax.experimental.pallas import tpu as pltpu


def _disc_mlp_kernel(s_ref, a_ref, w1s_ref, w1a_ref, b1_ref,
                     w2_ref, b2_ref, w3_ref, b3_ref, o_ref):
    """Fused 3-layer MLP on a (tb, .) slice of the batch.

    Layer 1 fuses concat([states, actions]) by splitting W1 (no (B, d_in) HBM
    round trip):   h1 = relu(states @ W1_s + actions @ W1_a + b1)
    Layer 2:       h2 = relu(h1 @ W2 + b2)           (bf16 operands, f32 acc)
    Layer 3:       NT matmul w3[8, h2] x h2[tb, h2]^T -> [8, tb]; only row 0 of
                   w3_ref is non-zero, so row 0 holds the logits, lane-major.
    Sigmoid = 1 / (1 + exp(-x)) via EUP exp + approx reciprocal on dense lanes.
    """
    h1 = jnp.dot(s_ref[...], w1s_ref[...], preferred_element_type=jnp.float32)
    h1 = h1 + jnp.dot(a_ref[...], w1a_ref[...], preferred_element_type=jnp.float32)
    h1 = jnp.maximum(h1 + b1_ref[...], 0.0)                       # ReLU

    h2 = jnp.dot(h1.astype(jnp.bfloat16), w2_ref[...],
                 preferred_element_type=jnp.float32)
    h2 = jnp.maximum(h2 + b2_ref[...], 0.0)                       # ReLU

    # Lane-dense layer 3: (8, h2) contracted with (tb, h2) on the feature dim.
    h3 = jax.lax.dot_general(w3_ref[...], h2,
                             (((1,), (1,)), ((), ())),
                             preferred_element_type=jnp.float32)   # (8, tb)
    logits = h3[0:1, :] + b3_ref[...]                              # (1, tb)
    o_ref[0] = pl.reciprocal(1.0 + jnp.exp(-logits),
                             approx=True).astype(o_ref.dtype)


def discriminator_forward(states, actions, params, *, tile_b=4096):
    """states: (B, num_states), actions: (B, num_actions) -> (B, 1) float32."""
    w1, b1, w2, b2, w3, b3 = params
    B, num_states = states.shape
    num_actions = actions.shape[1]
    d_in, h1 = w1.shape
    h2 = w2.shape[1]
    d_out = w3.shape[1]
    assert d_in == num_states + num_actions
    assert d_out == 1, "decentralized discriminator (out_dim == 1)"
    # TODO(synk): centralized disc_type (out_dim = n_agent > 1) would keep a
    # (tb, n_agent) MXU matmul for layer 3 instead of the single-logit NT path.

    # --- batch tile selection -------------------------------------------------
    # Per-grid-step overhead (~0.35 us) dwarfs per-tile compute at small B, so
    # B <= 1024 runs as one full-array block (no padding, no extra steps; the
    # grid is a sequential loop on single-TC v5e/v6e).  Larger batches use big
    # 256-row-aligned tiles with >= 2 steps so both v7x TensorCores get work;
    # the 4096-row cap keeps VMEM at a few MiB (safe on v7x's 64 MiB VMEM).
    if B <= 1024:
        tb = B
    else:
        tb = ((pl.cdiv(B, 2) + 255) // 256) * 256          # at least 2 grid steps
        tb = max(256, min(tb, (max(tile_b, 256) // 256) * 256))
    num_tiles = pl.cdiv(B, tb)
    grid = (num_tiles,)

    # --- fused concat: split W1 by input; bf16 MXU operands, f32 accumulate. ---
    w1_s = w1[:num_states].astype(jnp.bfloat16)
    w1_a = w1[num_states:].astype(jnp.bfloat16)
    w2_b = w2.astype(jnp.bfloat16)
    # layer-3 weight as a sublane-aligned (8, h2) f32 slab, row 0 = w3.
    w3_pad = jnp.zeros((8, h2), jnp.float32).at[0].set(w3[:, 0].astype(jnp.float32))
    b1_r = b1.reshape(1, h1).astype(jnp.float32)
    b2_r = b2.reshape(1, h2).astype(jnp.float32)
    b3_r = b3.reshape(1, 1).astype(jnp.float32)
    s_b = states.astype(jnp.bfloat16)
    a_b = actions.astype(jnp.bfloat16)

    cost = pl.CostEstimate(
        flops=2 * B * (d_in * h1 + h1 * h2 + h2),
        transcendentals=B,
        bytes_accessed=(s_b.size + a_b.size + w1_s.size + w1_a.size + w2_b.size) * 2
        + (w3_pad.size + b1_r.size + b2_r.size + 1) * 4 + B * 4)

    full2d = lambda i: (0, 0)       # weights/biases: same (whole) block every step
    out = pl.pallas_call(
        _disc_mlp_kernel,
        out_shape=jax.ShapeDtypeStruct((num_tiles, 1, tb), jnp.float32),
        grid_spec=pltpu.PrefetchScalarGridSpec(
            num_scalar_prefetch=0,
            grid=grid,
            in_specs=[
                pl.BlockSpec((tb, num_states), lambda i: (i, 0)),   # states tile
                pl.BlockSpec((tb, num_actions), lambda i: (i, 0)),  # actions tile
                pl.BlockSpec((num_states, h1), full2d),
                pl.BlockSpec((num_actions, h1), full2d),
                pl.BlockSpec((1, h1), full2d),
                pl.BlockSpec((h1, h2), full2d),
                pl.BlockSpec((1, h2), full2d),
                pl.BlockSpec((8, h2), full2d),
                pl.BlockSpec((1, 1), full2d),
            ],
            out_specs=pl.BlockSpec((1, 1, tb), lambda i: (i, 0, 0)),
        ),
        compiler_params=pltpu.CompilerParams(
            dimension_semantics=("parallel",)),
        cost_estimate=cost,
    )(s_b, a_b, w1_s, w1_a, b1_r, w2_b, b2_r, w3_pad, b3_r)

    # lane-major (num_tiles, 1, tb) -> (B, 1); drops any ragged-tail padding rows.
    return out.reshape(num_tiles * tb)[:B].reshape(B, 1)


def init_params(key, num_states, num_actions, num_hiddens=(128, 128), out_dim=1):
    """Deterministic synthetic weights; layers: (in->h1), (h1->h2), (h2->out)."""
    dims = [num_states + num_actions, *num_hiddens, out_dim]
    params = []
    for i in range(len(dims) - 1):
        key, kw, kb = jax.random.split(key, 3)
        bound = 1.0 / jnp.sqrt(dims[i])
        w = jax.random.uniform(kw, (dims[i], dims[i + 1]), jnp.float32, -bound, bound)
        b = jax.random.uniform(kb, (1, dims[i + 1]), jnp.float32, -bound, bound)
        params += [w, b]
    return tuple(params)


def reference_forward(states, actions, params):
    """Pure-JAX reference mirroring the kernel's bf16-operand / f32-accumulate math."""
    w1, b1, w2, b2, w3, b3 = params
    x = jnp.concatenate([states, actions], axis=-1).astype(jnp.bfloat16)
    h1 = jnp.dot(x, w1.astype(jnp.bfloat16),
                 preferred_element_type=jnp.float32) + b1.reshape(1, -1)
    h1 = jax.nn.relu(h1)
    h2 = jnp.dot(h1.astype(jnp.bfloat16), w2.astype(jnp.bfloat16),
                 preferred_element_type=jnp.float32) + b2.reshape(1, -1)
    h2 = jax.nn.relu(h2)
    h3 = h2 @ w3 + b3.reshape(1, 1)
    return jax.nn.sigmoid(h3)


if __name__ == "__main__":
    key = jax.random.PRNGKey(0)
    B, num_states, num_actions = 50, 24, 8          # decentralized -> out_dim = 1
    num_hiddens = (128, 128)

    k_p, k_s, k_a = jax.random.split(key, 3)
    params = init_params(k_p, num_states, num_actions, num_hiddens, out_dim=1)
    states = jax.random.normal(k_s, (B, num_states), jnp.float32)
    actions = jax.random.normal(k_a, (B, num_actions), jnp.float32)

    # B=50 -> one full-array block (tb=50, grid=(1,)), no tail padding.
    out = discriminator_forward(states, actions, params)
    out = jax.block_until_ready(out)

    ref = reference_forward(states, actions, params)
    assert out.shape == (B, 1)
    assert jnp.allclose(out, ref, atol=1e-2, rtol=1e-2), "mismatch vs JAX reference"
    print("KERNEL_OK")
</pallas_src>

<mosaic_0001>
module attributes {stable_mosaic.version = 11 : i64} {
  func.func @_disc_mlp_kernel(%arg0: i32, %arg1: memref<50x24xbf16, #tpu.memory_space<vmem>>, %arg2: memref<50x8xbf16, #tpu.memory_space<vmem>>, %arg3: memref<24x128xbf16, #tpu.memory_space<vmem>>, %arg4: memref<8x128xbf16, #tpu.memory_space<vmem>>, %arg5: memref<1x128xf32, #tpu.memory_space<vmem>>, %arg6: memref<128x128xbf16, #tpu.memory_space<vmem>>, %arg7: memref<1x128xf32, #tpu.memory_space<vmem>>, %arg8: memref<8x128xf32, #tpu.memory_space<vmem>>, %arg9: memref<1x1xf32, #tpu.memory_space<vmem>>, %arg10: memref<1x1x50xf32, #tpu.memory_space<vmem>>) attributes {dimension_semantics = [#tpu.dimension_semantics<parallel>], iteration_bounds = array<i64: 1>, scalar_prefetch = 0 : i64, scratch_operands = 0 : i64, tpu.core_type = #tpu.core_type<tc>, window_params = [{transform_indices = @transform_0, window_bounds = array<i64: 50, 24>}, {transform_indices = @transform_1, window_bounds = array<i64: 50, 8>}, {pipeline_mode = #tpu.pipeline_mode<synchronous>, transform_indices = @transform_2, window_bounds = array<i64: 24, 128>}, {pipeline_mode = #tpu.pipeline_mode<synchronous>, transform_indices = @transform_3, window_bounds = array<i64: 8, 128>}, {pipeline_mode = #tpu.pipeline_mode<synchronous>, transform_indices = @transform_4, window_bounds = array<i64: 1, 128>}, {pipeline_mode = #tpu.pipeline_mode<synchronous>, transform_indices = @transform_5, window_bounds = array<i64: 128, 128>}, {pipeline_mode = #tpu.pipeline_mode<synchronous>, transform_indices = @transform_6, window_bounds = array<i64: 1, 128>}, {pipeline_mode = #tpu.pipeline_mode<synchronous>, transform_indices = @transform_7, window_bounds = array<i64: 8, 128>}, {pipeline_mode = #tpu.pipeline_mode<synchronous>, transform_indices = @transform_8, window_bounds = array<i64: 1, 1>}, {transform_indices = @transform_9, window_bounds = array<i64: 1, 1, 50>}]} {
    %c0 = arith.constant 0 : index
    %c0_0 = arith.constant 0 : index
    %0 = vector.load %arg1[%c0, %c0_0] : memref<50x24xbf16, #tpu.memory_space<vmem>>, vector<50x24xbf16>
    %c0_1 = arith.constant 0 : index
    %c0_2 = arith.constant 0 : index
    %1 = vector.load %arg3[%c0_1, %c0_2] : memref<24x128xbf16, #tpu.memory_space<vmem>>, vector<24x128xbf16>
    %cst = arith.constant dense<0.000000e+00> : vector<50x128xf32>
    %2 = tpu.matmul %0, %1, %cst {dimension_numbers = #tpu.dot_dimension_numbers<[1], [0], [0], [1], [0, 0, 1, 1], [], []>} : vector<50x24xbf16>, vector<24x128xbf16>, vector<50x128xf32> -> vector<50x128xf32>
    %c0_3 = arith.constant 0 : index
    %c0_4 = arith.constant 0 : index
    %3 = vector.load %arg2[%c0_3, %c0_4] : memref<50x8xbf16, #tpu.memory_space<vmem>>, vector<50x8xbf16>
    %c0_5 = arith.constant 0 : index
    %c0_6 = arith.constant 0 : index
    %4 = vector.load %arg4[%c0_5, %c0_6] : memref<8x128xbf16, #tpu.memory_space<vmem>>, vector<8x128xbf16>
    %cst_7 = arith.constant dense<0.000000e+00> : vector<50x128xf32>
    %5 = tpu.matmul %3, %4, %cst_7 {dimension_numbers = #tpu.dot_dimension_numbers<[1], [0], [0], [1], [0, 0, 1, 1], [], []>} : vector<50x8xbf16>, vector<8x128xbf16>, vector<50x128xf32> -> vector<50x128xf32>
    %6 = arith.addf %2, %5 : vector<50x128xf32>
    %c0_8 = arith.constant 0 : index
    %c0_9 = arith.constant 0 : index
    %7 = vector.load %arg5[%c0_8, %c0_9] : memref<1x128xf32, #tpu.memory_space<vmem>>, vector<1x128xf32>
    %8 = vector.broadcast %7 : vector<1x128xf32> to vector<50x128xf32>
    %9 = arith.addf %6, %8 : vector<50x128xf32>
    %cst_10 = arith.constant 0.000000e+00 : f32
    %10 = vector.broadcast %cst_10 : f32 to vector<50x128xf32>
    %11 = arith.maximumf %9, %10 : vector<50x128xf32>
    %12 = arith.truncf %11 : vector<50x128xf32> to vector<50x128xbf16>
    %c0_11 = arith.constant 0 : index
    %c0_12 = arith.constant 0 : index
    %13 = vector.load %arg6[%c0_11, %c0_12] : memref<128x128xbf16, #tpu.memory_space<vmem>>, vector<128x128xbf16>
    %cst_13 = arith.constant dense<0.000000e+00> : vector<50x128xf32>
    %14 = tpu.matmul %12, %13, %cst_13 {dimension_numbers = #tpu.dot_dimension_numbers<[1], [0], [0], [1], [0, 0, 1, 1], [], []>} : vector<50x128xbf16>, vector<128x128xbf16>, vector<50x128xf32> -> vector<50x128xf32>
    %c0_14 = arith.constant 0 : index
    %c0_15 = arith.constant 0 : index
    %15 = vector.load %arg7[%c0_14, %c0_15] : memref<1x128xf32, #tpu.memory_space<vmem>>, vector<1x128xf32>
    %16 = vector.broadcast %15 : vector<1x128xf32> to vector<50x128xf32>
    %17 = arith.addf %14, %16 : vector<50x128xf32>
    %cst_16 = arith.constant 0.000000e+00 : f32
    %18 = vector.broadcast %cst_16 : f32 to vector<50x128xf32>
    %19 = arith.maximumf %17, %18 : vector<50x128xf32>
    %c0_17 = arith.constant 0 : index
    %c0_18 = arith.constant 0 : index
    %20 = vector.load %arg8[%c0_17, %c0_18] : memref<8x128xf32, #tpu.memory_space<vmem>>, vector<8x128xf32>
    %cst_19 = arith.constant dense<0.000000e+00> : vector<8x50xf32>
    %21 = tpu.matmul %20, %19, %cst_19 {dimension_numbers = #tpu.dot_dimension_numbers<[1], [1], [0], [0], [0, 0, 1, 0], [], []>} : vector<8x128xf32>, vector<50x128xf32>, vector<8x50xf32> -> vector<8x50xf32>
    %22 = vector.extract_strided_slice %21 {offsets = [0, 0], sizes = [1, 50], strides = [1, 1]} : vector<8x50xf32> to vector<1x50xf32>
    %c0_20 = arith.constant 0 : index
    %c0_21 = arith.constant 0 : index
    %23 = vector.load %arg9[%c0_20, %c0_21] : memref<1x1xf32, #tpu.memory_space<vmem>>, vector<1x1xf32>
    %24 = vector.broadcast %23 : vector<1x1xf32> to vector<1x50xf32>
    %25 = arith.addf %22, %24 : vector<1x50xf32>
    %cst_22 = arith.constant 0.000000e+00 : f32
    %26 = vector.broadcast %cst_22 : f32 to vector<1x50xf32>
    %27 = arith.subf %26, %25 : vector<1x50xf32>
    %28 = math.exp %27 : vector<1x50xf32>
    %cst_23 = arith.constant 1.000000e+00 : f32
    %29 = vector.broadcast %cst_23 : f32 to vector<1x50xf32>
    %30 = arith.addf %29, %28 : vector<1x50xf32>
    %31 = tpu.reciprocal %30 {approx = true} : vector<1x50xf32> -> vector<1x50xf32>
    %c0_24 = arith.constant 0 : index
    %c0_25 = arith.constant 0 : index
    %c0_26 = arith.constant 0 : index
    %32 = vector.load %arg10[%c0_24, %c0_25, %c0_26] : memref<1x1x50xf32, #tpu.memory_space<vmem>>, vector<1x1x50xf32>
    %33 = vector.shape_cast %32 : vector<1x1x50xf32> to vector<1x50xf32>
    %34 = vector.shape_cast %31 : vector<1x50xf32> to vector<1x1x50xf32>
    tpu.vector_store %arg10[%c0_24, %c0_25, %c0_26], %34 {strides = array<i32>} : memref<1x1x50xf32, #tpu.memory_space<vmem>>, vector<1x1x50xf32>,
    return
  }
  func.func @transform_0(%arg0: i32) -> (i32, i32) {
    %c0_i32 = arith.constant 0 : i32
    %c0_i32_0 = arith.constant 0 : i32
    return %arg0, %c0_i32 : i32, i32
  }
  func.func @transform_1(%arg0: i32) -> (i32, i32) {
    %c0_i32 = arith.constant 0 : i32
    %c0_i32_0 = arith.constant 0 : i32
    return %arg0, %c0_i32 : i32, i32
  }
  func.func @transform_2(%arg0: i32) -> (i32, i32) {
    %c0_i32 = arith.constant 0 : i32
    %c0_i32_0 = arith.constant 0 : i32
    %c0_i32_1 = arith.constant 0 : i32
    return %c0_i32, %c0_i32_0 : i32, i32
  }
  func.func @transform_3(%arg0: i32) -> (i32, i32) {
    %c0_i32 = arith.constant 0 : i32
    %c0_i32_0 = arith.constant 0 : i32
    %c0_i32_1 = arith.constant 0 : i32
    return %c0_i32, %c0_i32_0 : i32, i32
  }
  func.func @transform_4(%arg0: i32) -> (i32, i32) {
    %c0_i32 = arith.constant 0 : i32
    %c0_i32_0 = arith.constant 0 : i32
    %c0_i32_1 = arith.constant 0 : i32
    return %c0_i32, %c0_i32_0 : i32, i32
  }
  func.func @transform_5(%arg0: i32) -> (i32, i32) {
    %c0_i32 = arith.constant 0 : i32
    %c0_i32_0 = arith.constant 0 : i32
    %c0_i32_1 = arith.constant 0 : i32
    return %c0_i32, %c0_i32_0 : i32, i32
  }
  func.func @transform_6(%arg0: i32) -> (i32, i32) {
    %c0_i32 = arith.constant 0 : i32
    %c0_i32_0 = arith.constant 0 : i32
    %c0_i32_1 = arith.constant 0 : i32
    return %c0_i32, %c0_i32_0 : i32, i32
  }
  func.func @transform_7(%arg0: i32) -> (i32, i32) {
    %c0_i32 = arith.constant 0 : i32
    %c0_i32_0 = arith.constant 0 : i32
    %c0_i32_1 = arith.constant 0 : i32
    return %c0_i32, %c0_i32_0 : i32, i32
  }
  func.func @transform_8(%arg0: i32) -> (i32, i32) {
    %c0_i32 = arith.constant 0 : i32
    %c0_i32_0 = arith.constant 0 : i32
    %c0_i32_1 = arith.constant 0 : i32
    return %c0_i32, %c0_i32_0 : i32, i32
  }
  func.func @transform_9(%arg0: i32) -> (i32, i32, i32) {
    %c0_i32 = arith.constant 0 : i32
    %c0_i32_0 = arith.constant 0 : i32
    %c0_i32_1 = arith.constant 0 : i32
    return %arg0, %c0_i32, %c0_i32_0 : i32, i32, i32
  }
}

</mosaic_0001>

<bundles_post_ra>
// kernel: tpu_custom_call.1
= control target key start
LH: loop header
LB: loop body
LE: loop exit
PB: predicated region body
PF: predicated region fallthrough
CT: control target
= control target key end

     0   :  { %s709_s0 = inlined_call_operand.vmem [shape: bf16[50,24], index: 0, kind: input, shape index: {}]   ;;  %s710_s1 = inlined_call_operand.vmem [shape: bf16[50,8], index: 1, kind: input, shape index: {}]   ;;  %s711_s2 = inlined_call_operand.vmem [shape: bf16[24,128], index: 2, kind: input, shape index: {}]   ;;  %s712_s3 = inlined_call_operand.hbm [shape: bf16[8,128], index: 3, kind: input, shape index: {}]   ;;  %s713_s4 = inlined_call_operand.vmem [shape: f32[1,128], index: 4, kind: input, shape index: {}]   ;;  %s714_s5 = inlined_call_operand.vmem [shape: bf16[128,128], index: 5, kind: input, shape index: {}]   ;;  %s715_s6 = inlined_call_operand.vmem [shape: f32[1,128], index: 6, kind: input, shape index: {}]   ;;  %s716_s7 = inlined_call_operand.hbm [shape: f32[8,128], index: 7, kind: input, shape index: {}]   ;;  %s717_s8 = inlined_call_operand.<no memory space> [shape: f32[1,1], index: 8, kind: input, shape index: {}]   ;;  %s718_s9 = inlined_call_operand.hbm [shape: f32[1,1,50], index: 9, kind: output, shape index: {}]  }
   0x1   :  { %v14_v0 = vstv %s717_s8 }
   0x2   :  { %15 = vst [vmem:[#allocation2] sm:$0x1] %v14_v0 }
   0x3   :  { %16 = vsyncpa [#allocation4], 0 }
   0x4   :  { %17 = vsyncpa [#allocation7], 0 }
   0x5   :  { %18 = vsyncpa [#allocation5], 0  ;;  %s30_s13 = sshll.u32 %s712_s3, 4  ;;  %s575_s14 = smov [#allocation3]   ;;  %s31_s13 = int_to_ptr.hbm [resolvable:$true] %s30_s13 }
   0x6   :  { %s32_s15 = sshll.u32 %s575_s14, 4  ;;  %s47_s18 = sshll.u32 %s716_s7, 4  ;;  %s33_s15 = int_to_ptr.vmem [resolvable:$true] %s32_s15  ;;  %s48_s18 = int_to_ptr.hbm [resolvable:$true] %s47_s18 }
   0x7   :  { %35 = dma.hbm_to_vmem [thread:$0]  %s31_s13, 64, %s33_s15, [#allocation4]  }
   0x8   :  { %s576_s19 = smov [#allocation6]  }
   0x9   :  { %s49_s8 = sshll.u32 %s576_s19, 4  ;;  %s50_s8 = int_to_ptr.vmem [resolvable:$true] %s49_s8 }
   0xa   :  { %52 = dma.hbm_to_vmem [thread:$0]  %s48_s18, 128, %s50_s8, [#allocation7]  }
   0xb   :  { %569 = dma.done.wait [#allocation4], 64  }
   0xc   :  { %570 = vsyncadd [#allocation4], 4294967232 }
   0xd   :  { %571 = dma.done.wait [#allocation7], 128  }
   0xe   :  { %572 = vsyncadd [#allocation7], 4294967168  ;;  %vm113_vm0 = vcmask 1043456   ;;  %v81_v1 = vld [vmem:[#allocation3] sm:$0xf]  ;;  %vm100_vm1 = vcmask 64512  }
   0xf   :  { %v73_v2 = vld [vmem:[%s711_s2 + $0x8] sm:$0xf]  ;;  %v115_v3 = vsel %vm113_vm0, %v81_v1, 0  ;;  %v467_v4 = vld [vmem:[%s710_s1] sm:$0xff]  ;;  %vm172_vm2 = vcmask 195584   ;;  %v477_v12 = vld [vmem:[%s714_s5 + $0x38] sm:$0xff] }
  0x10   :  { %v168_v5 = vunpack.c.l.b16 %v73_v2  ;;  %124 = vmatpush.bf16.msra.mxu0 %v115_v3  ;;  %v466_v8 = vld [vmem:[%s711_s2] sm:$0xff]  ;;  %v468_v10 = vld [vmem:[%s710_s1 + $0x8] sm:$0xff]  ;;  %306 = vmatpush.bf16.msra.mxu2 %v477_v12  ;;  %v476_v13 = vld [vmem:[%s714_s5 + $0x30] sm:$0xff]  ;;  %s384_s10 = sshll.u32 %s718_s9, 4  ;;  %vm375_vm3 = vcmask 401408   ;;  %s385_s10 = int_to_ptr.hbm [resolvable:$true] %s384_s10 }
  0x11   :  { %v463_v9 = vld [vmem:[%s709_s0] sm:$0xff]  ;;  %v464_v11 = vld [vmem:[%s709_s0 + $0x8] sm:$0xff]  ;;  %478 = vmatpush.bf16.msra.mxu3 %v477_v12  ;;  %v469_v14 = vld [vmem:[%s710_s1 + $0x10] sm:$0xff] }
  0x12   :  { %v170_v6 = vpack.c.b16 %v168_v5, %v168_v5  ;;  %v465_v15 = vld [vmem:[%s709_s0 + $0x10] sm:$0xff]  ;;  %v80_v16 = vld [vmem:[%s710_s1 + $0x18] sm:$0x1]  ;;  %v475_v22 = vld [vmem:[%s714_s5 + $0x28] sm:$0xff] }
  0x13   :  { %407 = vmatmul.msk.bf16.vlgmr.msra.gmra.mxu0 %vm100_vm1, %v467_v4  ;;  %v95_v17 = vunpack.c.l.b16 %v80_v16  ;;  %v70_v19 = vld [vmem:[%s709_s0 + $0x18] sm:$0x1]  ;;  %v474_v23 = vld [vmem:[%s714_s5 + $0x20] sm:$0xff]  ;;  %v472_v25 = vld [vmem:[%s714_s5 + $0x10] sm:$0xff] }
  0x14   :  { %v186_v7 = vsel %vm113_vm0, %v170_v6, 0  ;;  %307 = vmatpush.bf16.msra.mxu2 %v476_v13  ;;  %v158_v20 = vunpack.c.l.b16 %v70_v19  ;;  %v473_v24 = vld [vmem:[%s714_s5 + $0x18] sm:$0xff]  ;;  %v471_v26 = vld [vmem:[%s714_s5 + $0x8] sm:$0xff]  ;;  %v470_v27 = vld [vmem:[%s714_s5] sm:$0xff] }
  0x15   :  { %194 = vmatpush.bf16.msra.mxu1 %v186_v7  ;;  %479 = vmatpush.bf16.msra.mxu3 %v476_v13  ;;  %v99_v18 = vpack.c.b16 %v95_v17, %v95_v17  ;;  %v491_v32 = vld [vmem:[%s713_s4] ss:$0 sm:$0xff] }
  0x16   :  { %v162_v21 = vpack.c.b16 %v158_v20, %v158_v20  ;;  %v362_v13 = vld [vmem:[#allocation2] sm:$0x1] }
  0x18   :  { %308 = vmatpush.bf16.msra.mxu2 %v475_v22 }
  0x19   :  { %195 = vmatpush.bf16.msra.mxu1 %v466_v8  ;;  %480 = vmatpush.bf16.msra.mxu3 %v475_v22 }
  0x1c   :  { %427 = vmatmul.msk.bf16.vlgmr.msra.gmra.mxu1 %vm172_vm2, %v463_v9  ;;  %309 = vmatpush.bf16.msra.mxu2 %v474_v23 }
  0x1d   :  { %481 = vmatpush.bf16.msra.mxu3 %v474_v23 }
  0x20   :  { %310 = vmatpush.bf16.msra.mxu2 %v473_v24 }
  0x21   :  { %482 = vmatpush.bf16.msra.mxu3 %v473_v24 }
  0x23   :  { %408 = vmatmul.msk.bf16.gmra.mxu0 %vm100_vm1, %v468_v10 }
  0x24   :  { %311 = vmatpush.bf16.msra.mxu2 %v472_v25 }
  0x25   :  { %483 = vmatpush.bf16.msra.mxu3 %v472_v25 }
  0x28   :  { %312 = vmatpush.bf16.msra.mxu2 %v471_v26 }
  0x29   :  { %484 = vmatpush.bf16.msra.mxu3 %v471_v26 }
  0x2c   :  { %428 = vmatmul.msk.bf16.gmra.mxu1 %vm172_vm2, %v464_v11  ;;  %313 = vmatpush.bf16.msra.mxu2 %v470_v27  ;;  %v492_v11 = vld [vmem:[%s715_s6] ss:$0 sm:$0xff]  ;;  %s578_s6 = smov [#allocation8]  }
  0x2d   :  { %485 = vmatpush.bf16.msra.mxu3 %v470_v27  ;;  %s382_s29 = sshll.u32 %s578_s6, 4  ;;  %s383_s29 = int_to_ptr.vmem [resolvable:$true] %s382_s29 }
  0x33   :  { %409 = vmatmul.msk.bf16.gmra.mxu0 %vm100_vm1, %v469_v14 }
  0x3c   :  { %429 = vmatmul.msk.bf16.gmra.mxu1 %vm172_vm2, %v465_v15  ;;  %v577_v15 = vmov 0  }
  0x3d   :  { %490 = vset.pattern.permute.xlu0 %v577_v15 }
  0x3e   :  { %365 = vperm.xlu0 %490, %v362_v13  }
  0x43   :  { %410 = vmatmul.msk.bf16.gmra.mxu0 %vm100_vm1, %v99_v18 }
  0x4c   :  { %430 = vmatmul.msk.bf16.gmra.mxu1 %vm172_vm2, %v162_v21 }
  0x90   :  { %v126_v28 = vpop.f32.mrf.mxu0 }
  0x98   :  { %v128_v29 = vpop.f32.mrf.mxu0 }
  0x99   :  { %v197_v30 = vpop.f32.mrf.mxu1 }
  0x9a   :  { %v198_v31 = vadd.f32 %v197_v30, %v126_v28 }
  0x9c   :  { %v220_v35 = vadd.f32 %v491_v32, %v198_v31  ;;  %v341_v31 = vld [vmem:[#allocation6] sm:$0xff] }
  0x9e   :  { %v227_v38 = vmax.f32 %v220_v35, 0.0 }
  0xa0   :  { %v131_v33 = vpop.f32.mrf.mxu0 }
  0xa1   :  { %v199_v34 = vpop.f32.mrf.mxu1 }
  0xa2   :  { %v200_v36 = vadd.f32 %v199_v34, %v128_v29 }
  0xa4   :  { %v221_v37 = vadd.f32 %v491_v32, %v200_v36 }
  0xa6   :  { %v228_v39 = vmax.f32 %v221_v37, 0.0 }
  0xa8   :  { %v234_v40 = vpack.c.bf16 %v228_v39, %v227_v38  ;;  %v133_v41 = vpop.f32.mrf.mxu0 }
  0xa9   :  { %v202_v42 = vpop.f32.mrf.mxu1 }
  0xaa   :  { %314 = vmatmul.bf16.vlgmr.msra.gmra.mxu2 %v234_v40  ;;  %v203_v43 = vadd.f32 %v202_v42, %v131_v33 }
  0xac   :  { %v222_v46 = vadd.f32 %v491_v32, %v203_v43 }
  0xae   :  { %v229_v49 = vmax.f32 %v222_v46, 0.0 }
  0xb0   :  { %v136_v44 = vpop.f32.mrf.mxu0 }
  0xb1   :  { %v204_v45 = vpop.f32.mrf.mxu1 }
  0xb2   :  { %v205_v47 = vadd.f32 %v204_v45, %v133_v41 }
  0xb4   :  { %v223_v48 = vadd.f32 %v491_v32, %v205_v47 }
  0xb6   :  { %v230_v50 = vmax.f32 %v223_v48, 0.0 }
  0xb8   :  { %v235_v51 = vpack.c.bf16 %v230_v50, %v229_v49  ;;  %v138_v52 = vpop.f32.mrf.mxu0 }
  0xb9   :  { %v207_v53 = vpop.f32.mrf.mxu1 }
  0xba   :  { %319 = vmatmul.bf16.gmra.mxu2 %v235_v51  ;;  %v208_v54 = vadd.f32 %v207_v53, %v136_v44 }
  0xbc   :  { %v224_v57 = vadd.f32 %v491_v32, %v208_v54 }
  0xbe   :  { %v231_v60 = vmax.f32 %v224_v57, 0.0 }
  0xc0   :  { %v141_v56 = vpop.f32.mrf.mxu0 }
  0xc1   :  { %v209_v55 = vpop.f32.mrf.mxu1 }
  0xc2   :  { %v210_v58 = vadd.f32 %v209_v55, %v138_v52 }
  0xc4   :  { %v225_v59 = vadd.f32 %v491_v32, %v210_v58 }
  0xc6   :  { %v232_v61 = vmax.f32 %v225_v59, 0.0 }
  0xc8   :  { %v236_v62 = vpack.c.bf16 %v232_v61, %v231_v60  ;;  %v143_v0 = vpop.f32.mrf.mxu0 }
  0xc9   :  { %v212_v63 = vpop.f32.mrf.mxu1 }
  0xca   :  { %v213_v1 = vadd.f32 %v212_v63, %v141_v56  ;;  %324 = vmatmul.bf16.vlgmr.msra.gmra.mxu3 %v236_v62 }
  0xcc   :  { %v226_v2 = vadd.f32 %v491_v32, %v213_v1  ;;  %v366_v32 = vpop.permute.xlu0 %365 }
  0xcd   :  { %v368_v33 = vperm.slane %v366_v32, 0 }
  0xce   :  { %v233_v4 = vmax.f32 %v226_v2, 0.0 }
  0xd0   :  { %v237_v5 = vpack.c.bf16 %v233_v4, %v233_v4 }
  0xd1   :  { %v214_v3 = vpop.f32.mrf.mxu1 }
  0xda   :  { %329 = vmatmul.bf16.gmra.mxu3 %v237_v5 }
 0x12d   :  { %v315_v6 = vpop.f32.mrf.mxu2 }
 0x12e   :  { %v316_v28 = vadd.f32 %v492_v11, %v315_v6 }
 0x130   :  { %v334_v30 = vmax.f32 %v316_v28, 0.0 }
 0x135   :  { %v317_v8 = vpop.f32.mrf.mxu2 }
 0x136   :  { %v318_v26 = vadd.f32 %v492_v11, %v317_v8 }
 0x138   :  { %v335_v29 = vmax.f32 %v318_v26, 0.0 }
 0x13d   :  { %v320_v10 = vpop.f32.mrf.mxu2 }
 0x13e   :  { %v321_v24 = vadd.f32 %v492_v11, %v320_v10 }
 0x140   :  { %v336_v27 = vmax.f32 %v321_v24, 0.0 }
 0x145   :  { %v322_v20 = vpop.f32.mrf.mxu2 }
 0x146   :  { %v323_v22 = vadd.f32 %v492_v11, %v322_v20 }
 0x148   :  { %v337_v25 = vmax.f32 %v323_v22, 0.0 }
 0x14d   :  { %v325_v7 = vpop.f32.mrf.mxu3 }
 0x14e   :  { %v326_v18 = vadd.f32 %v492_v11, %v325_v7 }
 0x150   :  { %v338_v23 = vmax.f32 %v326_v18, 0.0 }
 0x155   :  { %v327_v9 = vpop.f32.mrf.mxu3 }
 0x156   :  { %v328_v16 = vadd.f32 %v492_v11, %v327_v9 }
 0x158   :  { %v339_v19 = vmax.f32 %v328_v16, 0.0 }
 0x15d   :  { %v330_v12 = vpop.f32.mrf.mxu3 }
 0x15e   :  { %v331_v14 = vadd.f32 %v492_v11, %v330_v12 }
 0x160   :  { %v340_v17 = vmax.f32 %v331_v14, 0.0 }
 0x162   :  { %351 = vmatpush.xpose.msrb.mxu3 %v340_v17 }
 0x165   :  { %v332_v21 = vpop.f32.mrf.mxu3 }
 0x166   :  { %352 = vmatpush.xpose.msrb.mxu3 %v339_v19 }
 0x16a   :  { %353 = vmatpush.xpose.msrb.mxu3 %v338_v23 }
 0x16e   :  { %354 = vmatpush.xpose.msrb.mxu3 %v337_v25 }
 0x172   :  { %355 = vmatpush.xpose.msrb.mxu3 %v336_v27 }
 0x176   :  { %356 = vmatpush.xpose.msrb.mxu3 %v335_v29 }
 0x17a   :  { %357 = vmatpush.xpose.msrb.mxu3 %v334_v30 }
 0x17d   :  { %358 = vmatmul.f32.vlgmr.msrb.gmra.mxu3 %v341_v31 }
 0x200   :  { %v359_v34 = vpop.f32.mrf.mxu3 }
 0x201   :  { %v369_v35 = vadd.f32 %v368_v33, %v359_v34 }
 0x203   :  { %v370_v36 = vsub.f32 0.0, %v369_v35 }
 0x205   :  { %v371_v37 = vmul.f32 1.442695, %v370_v36 }
 0x207   :  { %493 = vpow2.f32 %v371_v37 }
 0x20d   :  { %v494_v38 = vpop.eup %493 }
 0x20e   :  { %v373_v39 = vadd.f32 1.0, %v494_v38 }
 0x210   :  { %495 = vrcp.f32 %v373_v39 }
 0x216   :  { %v496_v40 = vpop.eup %495 }
 0x217   :  { %376 = vst.msk [vmem:[#allocation8] sm:$0x1] %vm375_vm3, %v496_v40 }
 0x218   :  { %387 = dma.vmem_to_hbm [thread:$0]  %s383_s29, 16, %s385_s10, [#allocation5]  }
 0x219   :  { %573 = dma.done.wait [#allocation5], 16  }
 0x21a   :  { %574 = vsyncadd [#allocation5], 4294967280 }
 0x21b   :  { %392 = vsyncpa [#allocation4], 1 }
 0x21c   :  { %393 = vsyncpa [#allocation7], 1 }
 0x21d   :  { %394 = vsyncpa [#allocation5], 1 }

</bundles_post_ra>
